<compile_context>
chip_gen: v7x
topology: tpu7x:2x2x1
jax: 0.10.0
libtpu: 0.0.40
codegen_flags: <defaults>
</compile_context>

<pallas_src>
import functools

import jax
import jax.numpy as jnp
from jax.experimental import pallas as pl
from jax.experimental.pallas import tpu as pltpu


def _round_up(x, m):
    return ((x + m - 1) // m) * m


def _round_down(x, m):
    return (x // m) * m


_TM_TARGET = 512                      # batch-tile sweet spot (~85% HBM roofline)
_TN_TARGET = 512                      # n_out tile target when feature axis is tiled
_TILE_VMEM_BUDGET = 24 * 1024 * 1024  # conservative working-set budget (fits v7x)
_VMEM_LIMIT_BYTES = 48 * 1024 * 1024  # < physical VMEM on v5e / v6e / v7x


def _choose_nout_tile(n_out):
    """Tile n_out only when it is large and 128-aligned; otherwise a single
    full-width block (legal: block last dim == array dim, masked vst is cheap)."""
    if n_out % 128 == 0 and n_out >= 2 * _TN_TARGET:
        tn = _TN_TARGET
        while tn > 128 and n_out % tn != 0:
            tn -= 128
        if n_out % tn == 0:
            return tn
    return n_out


def _choose_batch_tile(B, tn, n_in, itemsize):
    """Pick (tm, B_padded).  Prefers an exact divisor of the 8-aligned batch
    (no host-side pad copy), keeps >= 2 grid steps for v7x's two TensorCores,
    and shrinks tm until the double-buffered working set fits the VMEM budget."""
    B8 = _round_up(max(B, 1), 8)
    min_tiles = 2 if B8 >= 16 else 1
    tm_cap = max(_round_down(min(B8 // min_tiles, _TM_TARGET), 8), 8)

    def tile_bytes(tm):
        streams = (tm * n_in + 2 * tm * tn) * itemsize * 2   # xb, gb, out (x2 buffers)
        params = (n_in * tn + 2 * tn) * 4                    # W + bias + weights_gn
        return streams + params

    while tm_cap > 8 and tile_bytes(tm_cap) > _TILE_VMEM_BUDGET:
        tm_cap = max(_round_down(tm_cap // 2, 8), 8)

    # Largest multiple of 8 <= tm_cap dividing B8 exactly -> zero padding copy.
    tm = tm_cap
    while tm >= 8 and B8 % tm != 0:
        tm -= 8
    if tm >= 8 and (tm >= 128 or tm * 4 >= tm_cap):
        return tm, B8

    # Fall back: bounded padding (< one tile of rows), never round_up(B, 512).
    n_tiles = max(pl.cdiv(B8, tm_cap), min_tiles)
    tm = max(_round_up(pl.cdiv(B8, n_tiles), 8), 8)
    return tm, _round_up(B8, tm)


def deepsf_kernel(x_ref, w_ref, b_ref, wgn_ref, g_ref, o_ref):
    # x_ref  : (tm, n_in)   batch tile of xb
    # w_ref  : (n_in, tn)   weights (resident when n_out is not tiled)
    # b_ref  : (1, tn)      linear bias (resident)
    # wgn_ref: (1, tn)      weights_gn  (resident)
    # g_ref  : (tm, tn)     gb tile
    # o_ref  : (tm, tn)     output tile
    acc = jnp.dot(x_ref[...], w_ref[...], preferred_element_type=jnp.float32)
    acc = acc + b_ref[...] + wgn_ref[...] * g_ref[...].astype(jnp.float32)
    o_ref[...] = acc.astype(o_ref.dtype)


@functools.partial(jax.jit, static_argnames=("compute_dtype",))
def deepsf_forward(xb, gb, W, b, weights_gn, *, compute_dtype=jnp.float32):
    """out = xb @ W + b + weights_gn * gb, with W of shape (n_in, n_out).

    compute_dtype: storage / MXU dtype for xb, W, gb (bfloat16 on v6e/v7x
    halves HBM bytes); accumulation, epilogue and output stay float32.
    """
    B, n_in = xb.shape
    n_out = W.shape[1]
    assert gb.shape == (B, n_out)
    out_dtype = xb.dtype

    itemsize = jnp.dtype(compute_dtype).itemsize
    tn = _choose_nout_tile(n_out)
    tm, B_p = _choose_batch_tile(B, tn, n_in, itemsize)
    grid_i = B_p // tm
    grid_j = n_out // tn
    params_resident = grid_j == 1   # parameter block index never changes

    # Streams stay at native shape (no padded rematerialization); only a
    # bounded (< tm rows) zero pad when B doesn't divide into the tile grid.
    x = xb.astype(compute_dtype)
    g = gb.astype(compute_dtype)
    if B_p != B:
        x = jnp.pad(x, ((0, B_p - B), (0, 0)))
        g = jnp.pad(g, ((0, B_p - B), (0, 0)))
    w = W.astype(compute_dtype)
    b2 = b.reshape(1, n_out).astype(jnp.float32)
    wgn2 = weights_gn.reshape(1, n_out).astype(jnp.float32)

    def _spec(block_shape, index_map, resident=False):
        if resident:
            try:
                return pl.BlockSpec(block_shape, index_map,
                                    pipeline_mode=pl.Buffered(1))
            except (TypeError, AttributeError):
                pass  # older BlockSpec signature -> default double buffering
        return pl.BlockSpec(block_shape, index_map)

    cost = pl.CostEstimate(
        flops=2 * B_p * n_in * n_out,
        transcendentals=0,
        bytes_accessed=(B_p * n_in + n_in * n_out + B_p * n_out) * itemsize
        + 2 * n_out * 4
        + B_p * n_out * jnp.dtype(out_dtype).itemsize,
    )

    out = pl.pallas_call(
        deepsf_kernel,
        out_shape=jax.ShapeDtypeStruct((B_p, n_out), out_dtype),
        grid_spec=pltpu.PrefetchScalarGridSpec(
            num_scalar_prefetch=0,
            grid=(grid_i, grid_j),
            in_specs=[
                _spec((tm, n_in), lambda i, j: (i, 0)),                   # xb tile
                _spec((n_in, tn), lambda i, j: (0, j), params_resident),  # W
                _spec((1, tn), lambda i, j: (0, j), params_resident),     # bias
                _spec((1, tn), lambda i, j: (0, j), params_resident),     # weights_gn
                _spec((tm, tn), lambda i, j: (i, j)),                     # gb tile
            ],
            out_specs=pl.BlockSpec((tm, tn), lambda i, j: (i, j)),
        ),
        compiler_params=pltpu.CompilerParams(
            dimension_semantics=("parallel", "parallel"),
            vmem_limit_bytes=_VMEM_LIMIT_BYTES,
        ),
        cost_estimate=cost,
    )(x, w, b2, wgn2, g)

    return out[:B] if B_p != B else out


def deepsf_reference(xb, gb, W, b, weights_gn):
    # Pure-JAX reference matching the torch forward exactly.
    krn = jnp.kron(jnp.ones((xb.shape[0], 1), xb.dtype), weights_gn[None, :])
    return xb @ W + b + krn * gb


if __name__ == "__main__":
    key = jax.random.PRNGKey(0)
    k_x, k_g, k_w, k_b, k_wgn = jax.random.split(key, 5)

    B, n_inputs, n_outputs = 8, 32, 16

    xb = jax.random.normal(k_x, (B, n_inputs), dtype=jnp.float32)
    gb = jax.random.normal(k_g, (B, n_outputs), dtype=jnp.float32)

    # Deterministic parameter init (shapes per DeepSF.__init__):
    #   weights_gn ~ randn(n_outputs)
    #   nn.Linear(n_inputs, n_outputs): weight (n_out, n_in), bias (n_out,)
    bound = 1.0 / (n_inputs ** 0.5)
    W_t = jax.random.uniform(k_w, (n_outputs, n_inputs), jnp.float32, -bound, bound)
    W = W_t.T  # kernel uses (n_in, n_out)
    b = jax.random.uniform(k_b, (n_outputs,), jnp.float32, -bound, bound)
    weights_gn = jax.random.normal(k_wgn, (n_outputs,), dtype=jnp.float32)

    out = deepsf_forward(xb, gb, W, b, weights_gn)
    out = jax.block_until_ready(out)

    ref = deepsf_reference(xb, gb, W, b, weights_gn)
    assert out.shape == (B, n_outputs)
    assert jnp.allclose(out, ref, atol=1e-5, rtol=1e-5), "mismatch vs reference"

    # TODO(synk): training_step / epoch-end helpers (MSE loss, optimizer) are
    # host-side training loop code, not part of the fused forward kernel.

    print("KERNEL_OK")
</pallas_src>

<mosaic_0001>
module attributes {stable_mosaic.version = 11 : i64} {
  func.func @deepsf_kernel(%arg0: i32, %arg1: i32, %arg2: memref<8x32xf32, #tpu.memory_space<vmem>>, %arg3: memref<32x16xf32, #tpu.memory_space<vmem>>, %arg4: memref<1x16xf32, #tpu.memory_space<vmem>>, %arg5: memref<1x16xf32, #tpu.memory_space<vmem>>, %arg6: memref<8x16xf32, #tpu.memory_space<vmem>>, %arg7: memref<8x16xf32, #tpu.memory_space<vmem>>) attributes {dimension_semantics = [#tpu.dimension_semantics<parallel>, #tpu.dimension_semantics<parallel>], iteration_bounds = array<i64: 1, 1>, scalar_prefetch = 0 : i64, scratch_operands = 0 : i64, tpu.core_type = #tpu.core_type<tc>, window_params = [{transform_indices = @transform_0, window_bounds = array<i64: 8, 32>}, {pipeline_mode = #tpu.pipeline_mode<synchronous>, transform_indices = @transform_1, window_bounds = array<i64: 32, 16>}, {pipeline_mode = #tpu.pipeline_mode<synchronous>, transform_indices = @transform_2, window_bounds = array<i64: 1, 16>}, {pipeline_mode = #tpu.pipeline_mode<synchronous>, transform_indices = @transform_3, window_bounds = array<i64: 1, 16>}, {transform_indices = @transform_4, window_bounds = array<i64: 8, 16>}, {transform_indices = @transform_5, window_bounds = array<i64: 8, 16>}]} {
    %c0 = arith.constant 0 : index
    %c0_0 = arith.constant 0 : index
    %0 = vector.load %arg2[%c0, %c0_0] : memref<8x32xf32, #tpu.memory_space<vmem>>, vector<8x32xf32>
    %c0_1 = arith.constant 0 : index
    %c0_2 = arith.constant 0 : index
    %1 = vector.load %arg3[%c0_1, %c0_2] : memref<32x16xf32, #tpu.memory_space<vmem>>, vector<32x16xf32>
    %cst = arith.constant dense<0.000000e+00> : vector<8x16xf32>
    %2 = tpu.matmul %0, %1, %cst {dimension_numbers = #tpu.dot_dimension_numbers<[1], [0], [0], [1], [0, 0, 1, 1], [], []>} : vector<8x32xf32>, vector<32x16xf32>, vector<8x16xf32> -> vector<8x16xf32>
    %c0_3 = arith.constant 0 : index
    %c0_4 = arith.constant 0 : index
    %3 = vector.load %arg4[%c0_3, %c0_4] : memref<1x16xf32, #tpu.memory_space<vmem>>, vector<1x16xf32>
    %4 = vector.broadcast %3 : vector<1x16xf32> to vector<8x16xf32>
    %5 = arith.addf %2, %4 : vector<8x16xf32>
    %c0_5 = arith.constant 0 : index
    %c0_6 = arith.constant 0 : index
    %6 = vector.load %arg5[%c0_5, %c0_6] : memref<1x16xf32, #tpu.memory_space<vmem>>, vector<1x16xf32>
    %c0_7 = arith.constant 0 : index
    %c0_8 = arith.constant 0 : index
    %7 = vector.load %arg6[%c0_7, %c0_8] : memref<8x16xf32, #tpu.memory_space<vmem>>, vector<8x16xf32>
    %8 = vector.broadcast %6 : vector<1x16xf32> to vector<8x16xf32>
    %9 = arith.mulf %8, %7 : vector<8x16xf32>
    %10 = arith.addf %5, %9 : vector<8x16xf32>
    %c0_9 = arith.constant 0 : index
    %c0_10 = arith.constant 0 : index
    %11 = vector.load %arg7[%c0_9, %c0_10] : memref<8x16xf32, #tpu.memory_space<vmem>>, vector<8x16xf32>
    tpu.vector_store %arg7[%c0_9, %c0_10], %10 {strides = array<i32>} : memref<8x16xf32, #tpu.memory_space<vmem>>, vector<8x16xf32>,
    return
  }
  func.func @transform_0(%arg0: i32, %arg1: i32) -> (i32, i32) {
    %c0_i32 = arith.constant 0 : i32
    %c0_i32_0 = arith.constant 0 : i32
    return %arg0, %c0_i32 : i32, i32
  }
  func.func @transform_1(%arg0: i32, %arg1: i32) -> (i32, i32) {
    %c0_i32 = arith.constant 0 : i32
    %c0_i32_0 = arith.constant 0 : i32
    return %c0_i32, %arg1 : i32, i32
  }
  func.func @transform_2(%arg0: i32, %arg1: i32) -> (i32, i32) {
    %c0_i32 = arith.constant 0 : i32
    %c0_i32_0 = arith.constant 0 : i32
    return %c0_i32, %arg1 : i32, i32
  }
  func.func @transform_3(%arg0: i32, %arg1: i32) -> (i32, i32) {
    %c0_i32 = arith.constant 0 : i32
    %c0_i32_0 = arith.constant 0 : i32
    return %c0_i32, %arg1 : i32, i32
  }
  func.func @transform_4(%arg0: i32, %arg1: i32) -> (i32, i32) {
    %c0_i32 = arith.constant 0 : i32
    return %arg0, %arg1 : i32, i32
  }
  func.func @transform_5(%arg0: i32, %arg1: i32) -> (i32, i32) {
    %c0_i32 = arith.constant 0 : i32
    return %arg0, %arg1 : i32, i32
  }
}

</mosaic_0001>

<bundles_post_ra>
// kernel: deepsf_forward.1
= control target key start
LH: loop header
LB: loop body
LE: loop exit
PB: predicated region body
PF: predicated region fallthrough
CT: control target
= control target key end

     0   :  { %v186_v3 = vmov 0.0|0.0   ;;  %vm187_vm0 = vmmov 0   ;;  %v188_v6 = vmov 0.0   ;;  %s256_s0 = inlined_call_operand.vmem [shape: f32[8,32], index: 0, kind: input, shape index: {}]   ;;  %s257_s1 = inlined_call_operand.vmem [shape: f32[32,16], index: 1, kind: input, shape index: {}]   ;;  %s258_s2 = inlined_call_operand.vmem [shape: f32[1,16], index: 2, kind: input, shape index: {}]   ;;  %s259_s3 = inlined_call_operand.vmem [shape: f32[1,16], index: 3, kind: input, shape index: {}]   ;;  %s260_s4 = inlined_call_operand.vmem [shape: f32[8,16], index: 4, kind: input, shape index: {}]   ;;  %s261_s5 = inlined_call_operand.hbm [shape: f32[8,16], index: 5, kind: output, shape index: {}]  }
   0x1   :  { %v22_v0 = vld [vmem:[%s257_s1] sm:$0xff]  ;;  %v23_v1 = vld [vmem:[%s257_s1 + $0x8] sm:$0xff]  ;;  %v24_v2 = vld [vmem:[%s257_s1 + $0x10] sm:$0xff]  ;;  %152 = vmatprep.subr.bf16.mxu0 %v186_v3  ;;  %149 = vmatprep.mubr.msk.f32.mxu0 %vm187_vm0, %v188_v6 }
   0x2   :  { %v153_v4 = vpack.c.bf16 %v23_v1, %v22_v0  ;;  %v25_v5 = vld [vmem:[%s257_s1 + $0x18] sm:$0xff] }
   0x3   :  { %10 = vsyncpa [#allocation3], 0  ;;  %v156_v7 = vpack.c.bf16 %v25_v5, %v24_v2  ;;  %v21_v8 = vld [vmem:[%s256_s0] sm:$0xff]  ;;  %vm33_vm1 = vcmask 261120   ;;  %s189_s8 = smov [#allocation2]   ;;  %vm117_vm2 = vcmask 130048  }
   0x4   :  { %154 = vmatpush3.bf16.msra.mxu0 %v153_v4  ;;  %v135_v9 = vld [vmem:[%s259_s3] ss:$0 sm:$0xff]  ;;  %s125_s9 = sshll.u32 %s189_s8, 4  ;;  %s126_s9 = int_to_ptr.vmem [resolvable:$true] %s125_s9 }
   0x5   :  { %155 = vmatprep.subr.bf16.mxu0 %v186_v3  ;;  %v108_v10 = vld [vmem:[%s260_s4] sm:$0xff]  ;;  %s162_s0 = scalar_lea.vmem %s126_s9, 128  ;;  %p167_p1 = scmp.lt.s32.totalorder %s126_s9, %s126_s9 }
   0x6   :  { %v133_v11 = vld [vmem:[%s258_s2] ss:$0 sm:$0xff]  ;;  %v115_v12 = vmul.f32 %v135_v9, %v108_v10  ;;  %p163_p0 = scmp.ne.s32.totalorder %s126_s9, %s162_s0  ;;  %p168_p2 = scmp.lt.s32.totalorder %s162_s0, %s162_s0 }
   0x8   :  { %157 = vmatpush3.bf16.msra.mxu0 %v156_v7  ;;  %p169_p3 = por %p168_p2, %p167_p1 }
   0xa   :  { %p170_p4 = pnand %p169_p3, %p163_p0 }
   0xb   :  { %150 = vmatmul.mubr.msk.f32.vlgmr.msra.gmra.mrb[0].mxu0 %vm33_vm1, %v21_v8 }
  0xde   :  { %v103_v13 = vpop.f32.mrb[0].mxu0 }
  0xdf   :  { %v104_v14 = vadd.f32 %v133_v11, %v103_v13  ;;  %v151_v15 = vpop.f32.mrb[1].mxu0 }
  0xe1   :  { %v116_v16 = vadd.f32 %v115_v12, %v104_v14 }
  0xe3   :  { %118 = vst.msk [vmem:[#allocation2] sm:$0xff] %vm117_vm2, %v116_v16 }
  0xe4   :  { %173 = shalt.err (!%p170_p4)
}
  0xe5   :  { %s174_s2 = scalar_lea.hbm %s261_s5, 128 }
  0xe6   :  { %p175_p5 = scmp.ne.s32.totalorder %s261_s5, %s174_s2  ;;  %p178_p6 = scmp.lt.u32.totalorder %s174_s2, %s261_s5 }
  0xe8   :  { %p180_p7 = pnand %p178_p6, %p175_p5 }
  0xea   :  { %183 = shalt.err (!%p180_p7)
}
  0xeb   :  { %128 = dma.vmem_to_hbm [thread:$0]  %s126_s9, 128, %s261_s5, [#allocation3]  }
  0xec   :  { %184 = dma.done.wait [#allocation3], 128  }
  0xed   :  { %185 = vsyncadd [#allocation3], 4294967168 }
  0xee   :  { %132 = vsyncpa [#allocation3], 1 }

</bundles_post_ra>
